<compile_context>
chip_gen: v5e
topology: v5e:2x2
jax: 0.10.0
libtpu: 0.0.40
codegen_flags: <defaults>
</compile_context>

<pallas_src>
import functools

import jax
import jax.numpy as jnp
from jax.experimental import pallas as pl
from jax.experimental.pallas import tpu as pltpu

_NEG_BIG = -1e30  # finite "minus infinity": safe under exp() rescaling (f32)


def _round_up(x: int, m: int) -> int:
    return ((x + m - 1) // m) * m


def _row_logsumexp_kernel(logits_ref, lse_ref, m_sc, l_sc, *, c: int, tc: int):
    """Online logsumexp over the class (last, 'arbitrary') grid axis."""
    j = pl.program_id(1)

    @pl.when(j == 0)
    def _init():
        m_sc[...] = jnp.full_like(m_sc, _NEG_BIG)
        l_sc[...] = jnp.zeros_like(l_sc)

    # Native-dtype tile streamed from HBM; upcast to f32 only here.
    xf = logits_ref[...].astype(jnp.float32)               # (TN, TC)

    if c % tc != 0:  # static: only emit masking code when a ragged tail exists
        # Mask the ragged class tail (and garbage boundary-block columns)
        # without materializing a padded copy of logits in HBM. The mask is a
        # cheap (1, TC) lane-index compare broadcast over rows.
        col = jax.lax.broadcasted_iota(jnp.int32, (1, tc), 1) + j * tc
        xf = jnp.where(col < c, xf, _NEG_BIG)

    # --- online logsumexp update (f32 accumulators) ---
    tile_max = jnp.max(xf, axis=1, keepdims=True)           # (TN, 1)
    m_new = jnp.maximum(m_sc[...], tile_max)
    l_sc[...] = jnp.exp(m_sc[...] - m_new) * l_sc[...] + jnp.sum(
        jnp.exp(xf - m_new), axis=1, keepdims=True)
    m_sc[...] = m_new

    @pl.when(j == pl.num_programs(1) - 1)
    def _finalize():
        lse_ref[...] = m_sc[...] + jnp.log(l_sc[...])


def _row_logsumexp(logits, *, tn: int, tc: int):
    """Per-row logsumexp of a (N, C) array via the Pallas kernel. Returns (N,) f32."""
    n, c = logits.shape
    itemsize = jnp.dtype(logits.dtype).itemsize

    # Clamp tile sizes to the (8, 128)-aligned array extents.
    tn = min(tn, _round_up(n, 8))
    tc = min(tc, _round_up(c, 128))

    # Keep the (double-buffered) logits tile within a conservative VMEM budget:
    # 2 * tile + headroom must fit even on v7x's 64 MiB TensorCore VMEM.
    max_tile_bytes = 20 * 1024 * 1024
    tc_cap = max(128, (max_tile_bytes // (tn * itemsize)) // 128 * 128)
    tc = min(tc, tc_cap)

    grid = (pl.cdiv(n, tn), pl.cdiv(c, tc))
    n_pad = grid[0] * tn  # output padded to a row-tile multiple -> no boundary writes

    tile_bytes = tn * tc * itemsize
    # 2x logits tile (double buffer) + small out/scratch + ~4 MiB Mosaic headroom,
    # capped below v7x's 64 MiB physical VMEM.
    vmem_limit = int(min(48 * 1024 * 1024,
                         max(16 * 1024 * 1024,
                             2 * tile_bytes + 4 * 1024 * 1024)))

    lse_padded = pl.pallas_call(
        functools.partial(_row_logsumexp_kernel, c=c, tc=tc),
        out_shape=jax.ShapeDtypeStruct((n_pad, 1), jnp.float32),
        grid_spec=pltpu.PrefetchScalarGridSpec(
            num_scalar_prefetch=0,
            grid=grid,
            in_specs=[pl.BlockSpec((tn, tc), lambda i, j: (i, j))],
            out_specs=pl.BlockSpec((tn, 1), lambda i, j: (i, 0)),
            scratch_shapes=[pltpu.VMEM((tn, 1), jnp.float32),
                            pltpu.VMEM((tn, 1), jnp.float32)],
        ),
        compiler_params=pltpu.CompilerParams(
            dimension_semantics=("parallel", "arbitrary"),
            vmem_limit_bytes=vmem_limit,
        ),
    )(logits)

    return lse_padded[:n, 0]


def denominator_cross_entropy_loss(logits, target, factor: float, *,
                                   tn: int = 256, tc: int = 8192):
    """logits: (N, C) float (f32/bf16); target: (N,) int class indices. Scalar f32."""
    lse = _row_logsumexp(logits, tn=tn, tc=tc)                       # (N,) f32

    # Tiny gather of logits[i, target[i]] done by XLA (reads N elements, not N*C).
    # TODO(synk): torch cross_entropy's ignore_index=-100 is not handled; the
    # module is expected to pass only valid class indices.
    picked = jnp.take_along_axis(
        logits, target.astype(jnp.int32)[:, None], axis=1)[:, 0].astype(jnp.float32)

    return jnp.mean(float(factor) * lse - picked)


def _reference(logits, target, factor):
    # pure-JAX reference of the PyTorch forward
    lf = logits.astype(jnp.float32)
    lse = jax.scipy.special.logsumexp(lf, axis=1)
    ce = jnp.mean(lse - lf[jnp.arange(lf.shape[0]), target])
    denom = jnp.mean(jnp.log(jnp.sum(jnp.exp(lf), axis=1)))
    return ce - (1.0 - factor) * denom


if __name__ == "__main__":
    key = jax.random.PRNGKey(0)
    k1, k2 = jax.random.split(key)

    N, C = 20, 200          # small, deliberately non-aligned (exercises ragged tiles)
    factor = 0.5

    logits = jax.random.normal(k1, (N, C), dtype=jnp.float32)
    target = jax.random.randint(k2, (N,), 0, C, dtype=jnp.int32)

    # Small tiles force several row tiles + class tiles so the online
    # logsumexp, the in-kernel tail masking and the parallel/arbitrary grid
    # are exercised at toy scale (grid = (3, 2) with boundary blocks).
    loss = denominator_cross_entropy_loss(logits, target, factor, tn=8, tc=128)
    jax.block_until_ready(loss)

    # Production tile defaults (clamped to the small shape).
    loss_default = denominator_cross_entropy_loss(logits, target, factor)
    jax.block_until_ready(loss_default)

    ref = _reference(logits, target, factor)
    assert jnp.allclose(loss, ref, atol=1e-5, rtol=1e-5), (loss, ref)
    assert jnp.allclose(loss_default, ref, atol=1e-5, rtol=1e-5), (loss_default, ref)

    # bf16 inputs are streamed natively (no upcast before pallas_call).
    logits_bf16 = logits.astype(jnp.bfloat16)
    loss_bf16 = denominator_cross_entropy_loss(logits_bf16, target, factor)
    jax.block_until_ready(loss_bf16)
    ref_bf16 = _reference(logits_bf16, target, factor)
    assert jnp.allclose(loss_bf16, ref_bf16, atol=1e-3, rtol=1e-3), (loss_bf16, ref_bf16)

    print("KERNEL_OK")
</pallas_src>

<mosaic_0001>
module attributes {stable_mosaic.version = 11 : i64} {
  func.func @_row_logsumexp_kernel(%arg0: i32, %arg1: i32, %arg2: memref<8x128xf32, #tpu.memory_space<vmem>>, %arg3: memref<8x1xf32, #tpu.memory_space<vmem>>, %arg4: memref<8x1xf32, #tpu.memory_space<vmem>>, %arg5: memref<8x1xf32, #tpu.memory_space<vmem>>) attributes {dimension_semantics = [#tpu.dimension_semantics<parallel>, #tpu.dimension_semantics<arbitrary>], iteration_bounds = array<i64: 3, 2>, scalar_prefetch = 0 : i64, scratch_operands = 2 : i64, tpu.core_type = #tpu.core_type<tc>, window_params = [{transform_indices = @transform_0, window_bounds = array<i64: 8, 128>}, {transform_indices = @transform_1, window_bounds = array<i64: 8, 1>}]} {
    %c0_i32 = arith.constant 0 : i32
    %0 = arith.cmpi eq, %arg1, %c0_i32 : i32
    %1 = arith.extui %0 : i1 to i32
    %c0_i32_0 = arith.constant 0 : i32
    %2 = arith.cmpi ne, %1, %c0_i32_0 : i32
    scf.if %2 {
      %cst_15 = arith.constant -1.000000e+30 : f32
      %34 = vector.broadcast %cst_15 : f32 to vector<8x1xf32>
      %c0_16 = arith.constant 0 : index
      %c0_17 = arith.constant 0 : index
      %35 = vector.load %arg4[%c0_16, %c0_17] : memref<8x1xf32, #tpu.memory_space<vmem>>, vector<8x1xf32>
      tpu.vector_store %arg4[%c0_16, %c0_17], %34 {strides = array<i32>} : memref<8x1xf32, #tpu.memory_space<vmem>>, vector<8x1xf32>,
      %cst_18 = arith.constant 0.000000e+00 : f32
      %36 = vector.broadcast %cst_18 : f32 to vector<8x1xf32>
      %c0_19 = arith.constant 0 : index
      %c0_20 = arith.constant 0 : index
      %37 = vector.load %arg5[%c0_19, %c0_20] : memref<8x1xf32, #tpu.memory_space<vmem>>, vector<8x1xf32>
      tpu.vector_store %arg5[%c0_19, %c0_20], %36 {strides = array<i32>} : memref<8x1xf32, #tpu.memory_space<vmem>>, vector<8x1xf32>,
    } else {
    }
    %c0 = arith.constant 0 : index
    %c0_1 = arith.constant 0 : index
    %3 = vector.load %arg2[%c0, %c0_1] : memref<8x128xf32, #tpu.memory_space<vmem>>, vector<8x128xf32>
    %4 = tpu.iota {dimensions = array<i32: 1>} : vector<1x128xi32>
    %c128_i32 = arith.constant 128 : i32
    %5 = arith.muli %arg1, %c128_i32 : i32
    %6 = vector.broadcast %5 : i32 to vector<1x128xi32>
    %7 = arith.addi %4, %6 : vector<1x128xi32>
    %c200_i32 = arith.constant 200 : i32
    %8 = vector.broadcast %c200_i32 : i32 to vector<1x128xi32>
    %9 = arith.cmpi slt, %7, %8 : vector<1x128xi32>
    %cst = arith.constant -1.000000e+30 : f32
    %10 = vector.shape_cast %9 : vector<1x128xi1> to vector<1x128xi1>
    %11 = vector.broadcast %10 : vector<1x128xi1> to vector<8x128xi1>
    %12 = vector.broadcast %cst : f32 to vector<8x128xf32>
    %13 = arith.select %11, %3, %12 : vector<8x128xi1>, vector<8x128xf32>
    %cst_2 = arith.constant dense<0xFF800000> : vector<8xf32>
    %14 = vector.multi_reduction <maximumf>, %13, %cst_2 [1] : vector<8x128xf32> to vector<8xf32>
    %15 = vector.shape_cast %14 : vector<8xf32> to vector<8x1xf32>
    %c0_3 = arith.constant 0 : index
    %c0_4 = arith.constant 0 : index
    %16 = vector.load %arg4[%c0_3, %c0_4] : memref<8x1xf32, #tpu.memory_space<vmem>>, vector<8x1xf32>
    %17 = arith.maximumf %16, %15 : vector<8x1xf32>
    %c0_5 = arith.constant 0 : index
    %c0_6 = arith.constant 0 : index
    %18 = vector.load %arg4[%c0_5, %c0_6] : memref<8x1xf32, #tpu.memory_space<vmem>>, vector<8x1xf32>
    %19 = arith.subf %18, %17 : vector<8x1xf32>
    %20 = math.exp %19 : vector<8x1xf32>
    %c0_7 = arith.constant 0 : index
    %c0_8 = arith.constant 0 : index
    %21 = vector.load %arg5[%c0_7, %c0_8] : memref<8x1xf32, #tpu.memory_space<vmem>>, vector<8x1xf32>
    %22 = arith.mulf %20, %21 : vector<8x1xf32>
    %23 = vector.broadcast %17 : vector<8x1xf32> to vector<8x128xf32>
    %24 = arith.subf %13, %23 : vector<8x128xf32>
    %25 = math.exp %24 : vector<8x128xf32>
    %cst_9 = arith.constant dense<0.000000e+00> : vector<8xf32>
    %26 = vector.multi_reduction <add>, %25, %cst_9 [1] : vector<8x128xf32> to vector<8xf32>
    %27 = vector.shape_cast %26 : vector<8xf32> to vector<8x1xf32>
    %28 = arith.addf %22, %27 : vector<8x1xf32>
    %c0_10 = arith.constant 0 : index
    %c0_11 = arith.constant 0 : index
    %29 = vector.load %arg5[%c0_10, %c0_11] : memref<8x1xf32, #tpu.memory_space<vmem>>, vector<8x1xf32>
    tpu.vector_store %arg5[%c0_10, %c0_11], %28 {strides = array<i32>} : memref<8x1xf32, #tpu.memory_space<vmem>>, vector<8x1xf32>,
    %c0_12 = arith.constant 0 : index
    %c0_13 = arith.constant 0 : index
    %30 = vector.load %arg4[%c0_12, %c0_13] : memref<8x1xf32, #tpu.memory_space<vmem>>, vector<8x1xf32>
    tpu.vector_store %arg4[%c0_12, %c0_13], %17 {strides = array<i32>} : memref<8x1xf32, #tpu.memory_space<vmem>>, vector<8x1xf32>,
    %c1_i32 = arith.constant 1 : i32
    %31 = arith.cmpi eq, %arg1, %c1_i32 : i32
    %32 = arith.extui %31 : i1 to i32
    %c0_i32_14 = arith.constant 0 : i32
    %33 = arith.cmpi ne, %32, %c0_i32_14 : i32
    scf.if %33 {
      %c0_15 = arith.constant 0 : index
      %c0_16 = arith.constant 0 : index
      %34 = vector.load %arg4[%c0_15, %c0_16] : memref<8x1xf32, #tpu.memory_space<vmem>>, vector<8x1xf32>
      %c0_17 = arith.constant 0 : index
      %c0_18 = arith.constant 0 : index
      %35 = vector.load %arg5[%c0_17, %c0_18] : memref<8x1xf32, #tpu.memory_space<vmem>>, vector<8x1xf32>
      %36 = math.log %35 : vector<8x1xf32>
      %37 = arith.addf %34, %36 : vector<8x1xf32>
      %c0_19 = arith.constant 0 : index
      %c0_20 = arith.constant 0 : index
      %38 = vector.load %arg3[%c0_19, %c0_20] : memref<8x1xf32, #tpu.memory_space<vmem>>, vector<8x1xf32>
      tpu.vector_store %arg3[%c0_19, %c0_20], %37 {strides = array<i32>} : memref<8x1xf32, #tpu.memory_space<vmem>>, vector<8x1xf32>,
    } else {
    }
    return
  }
  func.func @transform_0(%arg0: i32, %arg1: i32) -> (i32, i32) {
    %c0_i32 = arith.constant 0 : i32
    return %arg0, %arg1 : i32, i32
  }
  func.func @transform_1(%arg0: i32, %arg1: i32) -> (i32, i32) {
    %c0_i32 = arith.constant 0 : i32
    %c0_i32_0 = arith.constant 0 : i32
    return %arg0, %c0_i32 : i32, i32
  }
}

</mosaic_0001>

<bundles_post_ra>
// kernel: tpu_custom_call.1
= control target key start
LH: loop header
LB: loop body
LE: loop exit
PB: predicated region body
PF: predicated region fallthrough
CT: control target
= control target key end

     0   :  { %6 = vsyncpa [#allocation5], 0  ;;  %s607_s0 = inlined_call_operand.hbm [shape: f32[20,200], index: 0, kind: input, shape index: {}]   ;;  %s608_s1 = inlined_call_operand.vmem [shape: f32[24,1], index: 1, kind: output, shape index: {}]  }
   0x1   :  { %8 = vsyncpa [#allocation5 + $0x1], 0  ;;  %s485_s6 = smov 0   ;;  %s487_s7 = smov 0  }
   0x2   :  { %s489_s8 = smov 0   ;;  %s491_s9 = smov 0  }
   0x3   :  { %s493_s10 = smov 0   ;;  %s495_s11 = smov 0  }
   0x4   :  { %s497_s12 = smov 0   ;;  %s499_s13 = smov 0  }
   0x5 LB: > { %s278_s14 = sadd.s32 4294967295, %s470_s13   ;;  %s23_s15 = sadd.s32 1, %s462_s11  ;;  %s470_s13 = sphi %s499_s13, %s14_s13   ;;  %s466_s12 = sphi %s497_s12, %s617_s12   ;;  %s462_s11 = sphi %s495_s11, %s616_s11   ;;  %s458_s10 = sphi %s493_s10, %s615_s10   ;;  %s454_s9 = sphi %s491_s9, %s614_s9   ;;  %s450_s8 = sphi %s489_s8, %s613_s8   ;;  %s446_s7 = sphi %s487_s7, %s612_s7   ;;  %s442_s6 = sphi %s485_s6, %s611_s6  }
   0x6   : > { %p24_p0 = scmp.ge.s32.totalorder %s23_s15, 2  ;;  %s26_s16 = sadd.s32 1, %s466_s12 }
   0x7   : > { %s35_s17 = sadd.s32 1, %s450_s8  ;;  %p42_p1 = scmp.ne.s32.totalorder %s450_s8, %s446_s7 }
   0x8   : > { %s619_s15 = smov (%p24_p0, %s23_s15), 0  ;;  %s621_s16 = smov (!%p24_p0, %s26_s16), %s466_s12 }
   0x9   : > { %s31_s18 = ssub.s32 %s462_s11, %s619_s15  ;;  %p43_p2 = scmp.eq.s32.totalorder %s470_s13, 0 }
   0xa   : > { %p28_p3 = scmp.ge.s32.totalorder %s621_s16, 3  ;;  %p48_p4 = scmp.ne.s32.totalorder %s446_s7, %s442_s6 }
   0xb   : > { %p536_p5 = por %p43_p2, %p42_p1  ;;  %p49_p6 = scmp.eq.s32.totalorder %s278_s14, 0 }
   0xc   : > { %s623_s16 = smov (%p28_p3, %s621_s16), 0  ;;  %p299_p8 = scmp.lt.s32.totalorder %s470_s13, 6 }
   0xd   : > { %p542_p7 = por %p49_p6, %p48_p4  ;;  %s30_s21 = ssub.s32 %s466_s12, %s623_s16 }
   0xe   : > { %s32_s22 = sor.u32 %s31_s18, %s30_s21  ;;  %s98_s23 = sand.u32 1, %s450_s8  }
   0xf   : > { %p33_p9 = scmp.eq.s32.totalorder %s32_s22, 0  ;;  %s282_s24 = sshll.u32 %s98_s23, 3 }
  0x10   : > { %s283_s25 = sshll.u32 %s466_s12, 1  ;;  %s102_s29 = scalar_lea.vmem [#allocation4], %s282_s24 }
  0x11   : > { %s552_s26 = scalar_select %p33_p9, %s450_s8, %s35_s17  }
  0x12   : > { %s106_s27 = sadd.s32 %s462_s11, %s283_s25  ;;  %s112_s30 = sshll.u32 %s102_s29, 4  ;;  %s113_s30 = int_to_ptr.vmem [resolvable:$true] %s112_s30 }
  0x13   : > { %s284_s28 = sshll.u32 %s106_s27, 3  ;;  %p296_p10 = pnand %p299_p8, %p536_p5 }
  0x14   : > { %s108_s4 = scalar_lea.hbm %s607_s0, %s284_s28  ;;  %p285_p11 = scmp.ge.s32.totalorder %s470_s13, 1 }
  0x15   : > { %s110_s5 = sshll.u32 %s108_s4, 4  ;;  %p117_p12 = scmp.lt.s32.totalorder %s470_s13, 7  ;;  %s111_s5 = int_to_ptr.hbm [resolvable:$true] %s110_s5 }
  0x16   : > { %s99_s6 = scalar_lea.sflag [#allocation5], %s98_s23 }
  0x17   : > { %298 = dma.hbm_to_vmem [thread:$0]  (!%p296_p10), %s111_s5, 128, %s113_s30, %s99_s6  }
  0x18   : > { %p118_p13 = pnand %p285_p11, %p117_p12 }
  0x19   : > { %s123_s14 = sand.u32 (!%p118_p13), 1, %s446_s7  }
  0x1a   : > { %121 = sbr.rel (%p118_p13) target bundleno = 432 (0x1b0), region = 24  ;;  %s286_s17 = sshll.u32 (!%p118_p13), %s123_s14, 3 }
  0x1b   : > { %s124_s18 = scalar_lea.sflag (!%p118_p13), [#allocation5], %s123_s14  ;;  %s127_s21 = scalar_lea.vmem (!%p118_p13), [#allocation4], %s286_s17 }
  0x1f   : > { %437 = dma.done.wait (%p542_p7), %s124_s18, 128  }
  0x20   : > { %439 = vsyncadd (%p542_p7), %s124_s18, 4294967168  ;;  %p146_p0 = scmp.lt.s32.totalorder %s458_s10, 2  ;;  %p288_p1 = scmp.ne.s32.totalorder %s454_s9, 0 }
  0x22   : > { %s625_s10 = smov (!%p146_p0, %s458_s10), 2  ;;  %153 = sbr.rel (%p288_p1) target bundleno = 42 (0x2a), region = 32 }
  0x23   : > { %s287_s19 = sshll.u32 %s625_s10, 3 }
  0x24   : > { %s574_s24 = scalar_lea.vmem %s608_s1, %s287_s19 }
  0x27   : > { %vm154_vm0 = vcmask 7168   ;;  %v472_v0 = vmov -1e+30   ;;  %v473_v1 = vmov 0.0  }
  0x28   : > { %155 = vst.msk [vmem:[#allocation2] sm:$0xff] %vm154_vm0, %v472_v0 }
  0x29   : > { %156 = vst.msk [vmem:[#allocation3] sm:$0xff] %vm154_vm0, %v473_v1 }
  0x2a PF: > { %v158_v2 = vlaneseq  ;;  %s289_s20 = sshll.u32 %s454_s9, 7  ;;  %v157_v5 = vld [vmem:[%s127_s21] sm:$0xff]  ;;  %v474_v8 = vmov 0   ;;  %vm187_vm2 = vcmask 7168   ;;  %p290_p2 = scmp.ne.s32.totalorder %s454_s9, 1 }
  0x2b   : > { %v161_v3 = vstv %s289_s20  ;;  %367 = vset.pattern.permute.xlu0 %v474_v8 }
  0x2c   : > { %v159_v4 = vand.u32 127, %v158_v2 }
  0x2e   : > { %v162_v6 = vadd.s32 %v161_v3, %v159_v4 }
  0x2f   : > { %v169_v9 = vld [vmem:[#allocation2] sm:$0xff] }
  0x30   : > { %vm163_vm1 = vcmp.lt.s32.totalorder %v162_v6, 200  ;;  %v174_v19 = vld [vmem:[#allocation3] sm:$0xff] }
  0x31   : > { %v166_v7 = vsel %vm163_vm1, %v157_v5, -1e+30 }
  0x32   : > { %167 = vmax.xlane.f32.xlu0 %v166_v7 }
  0xa5   : > { %v168_v10 = vpop.xlane.xlu0 %167 }
  0xa6   : > { %v170_v11 = vmax.f32 %v169_v9, %v168_v10 }
  0xa8   : > { %v171_v12 = vsub.f32 %v169_v9, %v170_v11  ;;  %189 = vst.msk [vmem:[#allocation2] sm:$0xff] %vm187_vm2, %v170_v11  ;;  %178 = vperm.xlu0 %367, %v170_v11  }
  0xaa   : > { %v172_v17 = vmul.f32 1.442695, %v171_v12 }
 0x11a   : > { %v179_v13 = vpop.permute.xlu0 %178 }
 0x11b   : > { %v181_v14 = vsub.f32 %v166_v7, %v179_v13 }
 0x11d   : > { %v182_v15 = vmul.f32 1.442695, %v181_v14 }
 0x11f   : > { %368 = vpow2.f32 %v182_v15 }
 0x120   : > { %370 = vpow2.f32 %v172_v17 }
 0x125   : > { %v369_v16 = vpop.eup %368 }
 0x126   : > { %184 = vadd.xlane.f32.xlu1 %v369_v16  ;;  %v371_v18 = vpop.eup %370 }
 0x127   : > { %v175_v20 = vmul.f32 %v371_v18, %v174_v19 }
 0x198   : > { %193 = sbr.rel (%p290_p2) target bundleno = 432 (0x1b0), region = 36 }
 0x199   : > { %v185_v21 = vpop.xlane.xlu1 %184 }
 0x19a   : > { %v186_v22 = vadd.f32 %v185_v21, %v175_v20 }
 0x19c   : > { %188 = vst.msk [vmem:[#allocation3] sm:$0xff] %vm187_vm2, %v186_v22 }
 0x19d   : > { %v194_v25 = vld [vmem:[#allocation2] sm:$0xff] }
 0x1a3   : > { %v195_v23 = vld [vmem:[#allocation3] sm:$0xff] }
 0x1a4   : > { %372 = vlog2.f32 %v195_v23 }
 0x1aa   : > { %v373_v24 = vpop.eup %372 }
 0x1ab   : > { %v197_v26 = vmul.f32 0.6931472, %v373_v24 }
 0x1ad   : > { %v198_v27 = vadd.f32 %v197_v26, %v194_v25 }
 0x1af   : > { %199 = vst.msk [vmem:[%s574_s24] sm:$0xff] %vm187_vm2, %v198_v27 }
 0x1b0 PF: > { %s14_s13 = sadd.s32 1, %s470_s13   ;;  %s611_s6 = smov %s446_s7 }
 0x1b1   : > { %p11_p3 = scmp.ge.s32.totalorder %s14_s13, 8   ;;  %s612_s7 = smov %s450_s8 }
 0x1b2   : > { %s613_s8 = smov %s552_s26  ;;  %s614_s9 = smov %s462_s11 }
 0x1b3   : > { %s615_s10 = smov %s466_s12  ;;  %s616_s11 = smov %s619_s15 }
 0x1b4   : > { %s617_s12 = smov %s623_s16  ;;  %13 = sbr.rel (!%p11_p3) target bundleno = 5 (0x5), region = 72 }
 0x1b9   :  { %219 = vsyncpa [#allocation5], 1 }
 0x1ba   :  { %221 = vsyncpa [#allocation5 + $0x1], 1 }

</bundles_post_ra>
